<compile_context>
chip_gen: v7x
topology: tpu7x:2x2x1
jax: 0.10.0
libtpu: 0.0.40
codegen_flags: <defaults>
</compile_context>

<pallas_src>
import functools

import jax
import jax.numpy as jnp
from jax.experimental import pallas as pl
from jax.experimental.pallas import tpu as pltpu


NEG_SLOPE = 0.01  # nn.LeakyReLU() default negative slope


def _round_up(x, m):
    return ((x + m - 1) // m) * m


def prepare_params(params, compute_dtype=jnp.bfloat16):
    """One-time parameter prep (cast + lane padding). Do NOT call per forward."""
    w1, b1, w2, b2 = params
    D, H = w1.shape
    O = w2.shape[1]
    Hp = _round_up(max(H, 1), 128)  # hidden dim padded to a full lane tile
    w1p = jnp.zeros((D, Hp), compute_dtype).at[:, :H].set(w1.astype(compute_dtype))
    b1p = jnp.zeros((1, Hp), jnp.float32).at[:, :H].set(
        b1.astype(jnp.float32).reshape(1, H))
    w2p = jnp.zeros((Hp, O), compute_dtype).at[:H, :].set(w2.astype(compute_dtype))
    b2p = b2.astype(jnp.float32).reshape(1, O)
    return w1p, b1p, w2p, b2p


def _mlp_kernel(x_ref, w1_ref, b1_ref, w2_ref, b2_ref, o_ref, *, sub):
    # Weights / biases are grid-resident (same block every step); load once.
    w1 = w1_ref[...]
    w2 = w2_ref[...]
    Hp = w1.shape[1]
    O = w2.shape[1]
    # Hoist bias broadcasts out of the row-tile loop (broadcast_in_dim is not CSE'd).
    b1 = jnp.broadcast_to(b1_ref[...], (sub, Hp))
    b2 = jnp.broadcast_to(b2_ref[...], (sub, O))
    n_sub = x_ref.shape[0] // sub

    def body(i, carry):
        r = pl.multiple_of(i * sub, sub)
        # Cast to the compute dtype INSIDE the kernel (VPU work hidden under DMA).
        xs = x_ref[pl.ds(r, sub), :].astype(w1.dtype)
        h = jnp.dot(xs, w1, preferred_element_type=jnp.float32) + b1
        h = jnp.maximum(h, NEG_SLOPE * h)  # LeakyReLU(0.01) in f32
        out = jnp.dot(h.astype(w2.dtype), w2,
                      preferred_element_type=jnp.float32) + b2
        o_ref[pl.ds(r, sub), :] = out.astype(o_ref.dtype)
        return carry

    jax.lax.fori_loop(0, n_sub, body, 0, unroll=True)


def style_filter_res1(x, prepared_params, *, block_b=None, out_dtype=None):
    """Fused StyleFilter_res1 forward: x -> Linear -> LeakyReLU -> Linear.

    x: [B, D] (kept in its own dtype; cast to the weights' dtype inside the kernel).
    prepared_params: output of prepare_params().
    """
    w1p, b1p, w2p, b2p = prepared_params
    B, D = x.shape
    Hp = w1p.shape[1]
    O = w2p.shape[1]
    if out_dtype is None:
        out_dtype = x.dtype

    if block_b is None:
        # MXU-aligned batch tile; big cap = fewer grid steps / DMA descriptors.
        block_b = min(_round_up(B, 128), 1024)
        # v7x has 2 TensorCores: split mid/large batches into >=2 parallel grid
        # steps so both cores get work (no effect on single-core v5e/v6e).
        if B >= 256:
            block_b = min(block_b, _round_up(-(-B // 2), 128))

    # Row sub-tiling inside one grid step keeps the f32 hidden activation small
    # (no vreg-file spill once block_b grows past 512).
    if block_b <= 512:
        sub = block_b
    elif block_b % 256 == 0:
        sub = 256
    else:
        sub = 128

    grid = (pl.cdiv(B, block_b),)
    resident = lambda i: (0, 0)  # weights/biases: same block every grid step

    # Request only the VMEM we actually need (+2x headroom), clamped to 16-32 MiB
    # (v7x has only 64 MiB physical per core).
    isz = lambda dt: jnp.dtype(dt).itemsize
    vmem_need = (
        2 * block_b * D * isz(x.dtype)            # x double-buffer
        + 2 * block_b * O * isz(out_dtype)        # out double-buffer
        + 2 * (D * Hp + Hp * O) * isz(w1p.dtype)  # weights
        + 2 * (Hp + O) * 4                        # biases
        + sub * (Hp + O) * 4                      # f32 intermediates
    )
    vmem_limit = int(min(max(2 * vmem_need, 16 << 20), 32 << 20))

    kernel = functools.partial(_mlp_kernel, sub=sub)

    return pl.pallas_call(
        kernel,
        out_shape=jax.ShapeDtypeStruct((B, O), out_dtype),
        grid_spec=pltpu.PrefetchScalarGridSpec(
            num_scalar_prefetch=0,
            grid=grid,
            in_specs=[
                pl.BlockSpec((block_b, D), lambda i: (i, 0)),  # x tile (streams)
                pl.BlockSpec((D, Hp), resident),               # W1 (hidden padded)
                pl.BlockSpec((1, Hp), resident),               # b1
                pl.BlockSpec((Hp, O), resident),               # W2
                pl.BlockSpec((1, O), resident),                # b2
            ],
            out_specs=pl.BlockSpec((block_b, O), lambda i: (i, 0)),  # unpadded (B, 64)
        ),
        compiler_params=pltpu.CompilerParams(
            dimension_semantics=("parallel",),
            vmem_limit_bytes=vmem_limit,
        ),
    )(x, w1p, b1p, w2p, b2p)


def init_params(key, inputsize):
    """Deterministic init mimicking PyTorch nn.Linear (uniform +-1/sqrt(fan_in))."""
    dims = [(inputsize, inputsize // 8),
            (inputsize // 8, 64)]
    params = []
    for i, (fan_in, fan_out) in enumerate(dims):
        kw, kb = jax.random.split(jax.random.fold_in(key, i))
        bound = 1.0 / (fan_in ** 0.5)
        w = jax.random.uniform(kw, (fan_in, fan_out), jnp.float32, -bound, bound)
        b = jax.random.uniform(kb, (1, fan_out), jnp.float32, -bound, bound)
        params += [w, b]
    return tuple(params)


def reference_forward(x, params, compute_dtype=None):
    """Pure-JAX reference. If compute_dtype is given, mirror the kernel's casts."""
    w1, b1, w2, b2 = params
    if compute_dtype is None:
        h = x @ w1 + b1
        h = jnp.maximum(h, NEG_SLOPE * h)
        return h @ w2 + b2
    xc = x.astype(compute_dtype)
    h = jnp.dot(xc, w1.astype(compute_dtype),
                preferred_element_type=jnp.float32) + b1
    h = jnp.maximum(h, NEG_SLOPE * h)
    out = jnp.dot(h.astype(compute_dtype), w2.astype(compute_dtype),
                  preferred_element_type=jnp.float32) + b2
    return out


if __name__ == "__main__":
    key = jax.random.PRNGKey(0)
    inputsize = 128          # D; hidden = 16, output = 64
    batch = 16

    kx, kp = jax.random.split(key)
    x = jax.random.normal(kx, (batch, inputsize), dtype=jnp.float32)
    params = init_params(kp, inputsize)

    # 1) f32 compute path: tight check vs the pure-f32 reference.
    prep_f32 = prepare_params(params, compute_dtype=jnp.float32)
    out_f32 = jax.block_until_ready(style_filter_res1(x, prep_f32))
    ref_f32 = reference_forward(x, params)
    assert out_f32.shape == (batch, 64), out_f32.shape
    assert jnp.allclose(out_f32, ref_f32, atol=1e-5, rtol=1e-5), \
        float(jnp.max(jnp.abs(out_f32 - ref_f32)))

    # 2) bf16 compute path (default perf path): check vs a cast-matched reference.
    prep_bf16 = prepare_params(params)  # bf16 weights, prepared once
    out_bf16 = jax.block_until_ready(style_filter_res1(x, prep_bf16))
    ref_bf16 = reference_forward(x, params, compute_dtype=jnp.bfloat16)
    assert out_bf16.shape == (batch, 64), out_bf16.shape
    assert jnp.allclose(out_bf16, ref_bf16, atol=1e-2, rtol=1e-2), \
        float(jnp.max(jnp.abs(out_bf16 - ref_bf16)))

    # 3) bf16 output dtype (store-bandwidth option): smoke check.
    out_b = jax.block_until_ready(
        style_filter_res1(x, prep_bf16, out_dtype=jnp.bfloat16))
    assert out_b.shape == (batch, 64) and out_b.dtype == jnp.bfloat16
    assert jnp.allclose(out_b.astype(jnp.float32), ref_bf16, atol=5e-2, rtol=5e-2)

    print("KERNEL_OK")
</pallas_src>

<mosaic_0001>
module attributes {stable_mosaic.version = 11 : i64} {
  func.func @_mlp_kernel(%arg0: i32, %arg1: memref<128x128xf32, #tpu.memory_space<vmem>>, %arg2: memref<128x128xf32, #tpu.memory_space<vmem>>, %arg3: memref<1x128xf32, #tpu.memory_space<vmem>>, %arg4: memref<128x64xf32, #tpu.memory_space<vmem>>, %arg5: memref<1x64xf32, #tpu.memory_space<vmem>>, %arg6: memref<128x64xf32, #tpu.memory_space<vmem>>) attributes {dimension_semantics = [#tpu.dimension_semantics<parallel>], iteration_bounds = array<i64: 1>, scalar_prefetch = 0 : i64, scratch_operands = 0 : i64, tpu.core_type = #tpu.core_type<tc>, window_params = [{transform_indices = @transform_0, window_bounds = array<i64: 128, 128>}, {pipeline_mode = #tpu.pipeline_mode<synchronous>, transform_indices = @transform_1, window_bounds = array<i64: 128, 128>}, {pipeline_mode = #tpu.pipeline_mode<synchronous>, transform_indices = @transform_2, window_bounds = array<i64: 1, 128>}, {pipeline_mode = #tpu.pipeline_mode<synchronous>, transform_indices = @transform_3, window_bounds = array<i64: 128, 64>}, {pipeline_mode = #tpu.pipeline_mode<synchronous>, transform_indices = @transform_4, window_bounds = array<i64: 1, 64>}, {transform_indices = @transform_5, window_bounds = array<i64: 128, 64>}]} {
    %c0 = arith.constant 0 : index
    %c0_0 = arith.constant 0 : index
    %0 = vector.load %arg2[%c0, %c0_0] : memref<128x128xf32, #tpu.memory_space<vmem>>, vector<128x128xf32>
    %c0_1 = arith.constant 0 : index
    %c0_2 = arith.constant 0 : index
    %1 = vector.load %arg4[%c0_1, %c0_2] : memref<128x64xf32, #tpu.memory_space<vmem>>, vector<128x64xf32>
    %c0_3 = arith.constant 0 : index
    %c0_4 = arith.constant 0 : index
    %2 = vector.load %arg3[%c0_3, %c0_4] : memref<1x128xf32, #tpu.memory_space<vmem>>, vector<1x128xf32>
    %3 = vector.shape_cast %2 : vector<1x128xf32> to vector<1x128xf32>
    %4 = vector.broadcast %3 : vector<1x128xf32> to vector<128x128xf32>
    %c0_5 = arith.constant 0 : index
    %c0_6 = arith.constant 0 : index
    %5 = vector.load %arg5[%c0_5, %c0_6] : memref<1x64xf32, #tpu.memory_space<vmem>>, vector<1x64xf32>
    %6 = vector.shape_cast %5 : vector<1x64xf32> to vector<1x64xf32>
    %7 = vector.broadcast %6 : vector<1x64xf32> to vector<128x64xf32>
    %c0_i32 = arith.constant 0 : i32
    %c128_i32 = arith.constant 128 : i32
    %8 = arith.muli %c0_i32, %c128_i32 : i32
    %9 = tpu.assume_multiple %8, 128 : i32
    %10 = arith.index_cast %9 : i32 to index
    %c0_7 = arith.constant 0 : index
    %11 = vector.load %arg1[%10, %c0_7] : memref<128x128xf32, #tpu.memory_space<vmem>>, vector<128x128xf32>
    %cst = arith.constant dense<0.000000e+00> : vector<128x128xf32>
    %12 = tpu.matmul %11, %0, %cst {dimension_numbers = #tpu.dot_dimension_numbers<[1], [0], [0], [1], [0, 0, 1, 1], [], []>} : vector<128x128xf32>, vector<128x128xf32>, vector<128x128xf32> -> vector<128x128xf32>
    %13 = arith.addf %12, %4 : vector<128x128xf32>
    %cst_8 = arith.constant 0.00999999977 : f32
    %14 = vector.broadcast %cst_8 : f32 to vector<128x128xf32>
    %15 = arith.mulf %14, %13 : vector<128x128xf32>
    %16 = arith.maximumf %13, %15 : vector<128x128xf32>
    %cst_9 = arith.constant dense<0.000000e+00> : vector<128x64xf32>
    %17 = tpu.matmul %16, %1, %cst_9 {dimension_numbers = #tpu.dot_dimension_numbers<[1], [0], [0], [1], [0, 0, 1, 1], [], []>} : vector<128x128xf32>, vector<128x64xf32>, vector<128x64xf32> -> vector<128x64xf32>
    %18 = arith.addf %17, %7 : vector<128x64xf32>
    %19 = arith.index_cast %9 : i32 to index
    %c0_10 = arith.constant 0 : index
    %20 = vector.load %arg6[%19, %c0_10] : memref<128x64xf32, #tpu.memory_space<vmem>>, vector<128x64xf32>
    tpu.vector_store %arg6[%19, %c0_10], %18 {strides = array<i32>} : memref<128x64xf32, #tpu.memory_space<vmem>>, vector<128x64xf32>,
    %c1_i32 = arith.constant 1 : i32
    return
  }
  func.func @transform_0(%arg0: i32) -> (i32, i32) {
    %c0_i32 = arith.constant 0 : i32
    %c0_i32_0 = arith.constant 0 : i32
    return %arg0, %c0_i32 : i32, i32
  }
  func.func @transform_1(%arg0: i32) -> (i32, i32) {
    %c0_i32 = arith.constant 0 : i32
    %c0_i32_0 = arith.constant 0 : i32
    %c0_i32_1 = arith.constant 0 : i32
    return %c0_i32, %c0_i32_0 : i32, i32
  }
  func.func @transform_2(%arg0: i32) -> (i32, i32) {
    %c0_i32 = arith.constant 0 : i32
    %c0_i32_0 = arith.constant 0 : i32
    %c0_i32_1 = arith.constant 0 : i32
    return %c0_i32, %c0_i32_0 : i32, i32
  }
  func.func @transform_3(%arg0: i32) -> (i32, i32) {
    %c0_i32 = arith.constant 0 : i32
    %c0_i32_0 = arith.constant 0 : i32
    %c0_i32_1 = arith.constant 0 : i32
    return %c0_i32, %c0_i32_0 : i32, i32
  }
  func.func @transform_4(%arg0: i32) -> (i32, i32) {
    %c0_i32 = arith.constant 0 : i32
    %c0_i32_0 = arith.constant 0 : i32
    %c0_i32_1 = arith.constant 0 : i32
    return %c0_i32, %c0_i32_0 : i32, i32
  }
  func.func @transform_5(%arg0: i32) -> (i32, i32) {
    %c0_i32 = arith.constant 0 : i32
    %c0_i32_0 = arith.constant 0 : i32
    return %arg0, %c0_i32 : i32, i32
  }
}

</mosaic_0001>

<bundles_post_ra>
// kernel: tpu_custom_call.1
= control target key start
LH: loop header
LB: loop body
LE: loop exit
PB: predicated region body
PF: predicated region fallthrough
CT: control target
= control target key end

     0   :  { %10 = vsyncpa [#allocation3], 0  ;;  %vm405_vm0 = vcmask 523264   ;;  %s936_s0 = inlined_call_operand.vmem [shape: f32[16,128], index: 0, kind: input, shape index: {}]   ;;  %s937_s1 = inlined_call_operand.vmem [shape: f32[128,128], index: 1, kind: input, shape index: {}]   ;;  %s938_s2 = inlined_call_operand.vmem [shape: f32[1,128], index: 2, kind: input, shape index: {}]   ;;  %s939_s3 = inlined_call_operand.vmem [shape: f32[128,64], index: 3, kind: input, shape index: {}]   ;;  %s940_s4 = inlined_call_operand.vmem [shape: f32[1,64], index: 4, kind: input, shape index: {}]   ;;  %s941_s5 = inlined_call_operand.hbm [shape: f32[16,64], index: 5, kind: output, shape index: {}]  }
   0x1   :  { %v21_v0 = vld [vmem:[%s937_s1] sm:$0xff]  ;;  %v22_v1 = vld [vmem:[%s937_s1 + $0x8] sm:$0xff]  ;;  %v23_v3 = vld [vmem:[%s937_s1 + $0x10] sm:$0xff] }
   0x2   :  { %v616_v2 = vpack.c.bf16 %v22_v1, %v21_v0  ;;  %v24_v4 = vld [vmem:[%s937_s1 + $0x18] sm:$0xff]  ;;  %v25_v6 = vld [vmem:[%s937_s1 + $0x20] sm:$0xff]  ;;  %v26_v7 = vld [vmem:[%s937_s1 + $0x28] sm:$0xff] }
   0x3   :  { %v620_v5 = vpack.c.bf16 %v24_v4, %v23_v3  ;;  %v624_v8 = vpack.c.bf16 %v26_v7, %v25_v6  ;;  %v67_v9 = vld [vmem:[%s936_s0] sm:$0xff]  ;;  %v27_v10 = vld [vmem:[%s937_s1 + $0x30] sm:$0xff]  ;;  %v28_v11 = vld [vmem:[%s937_s1 + $0x38] sm:$0xff] }
   0x4   :  { %617 = vmatprep.subr.bf16.mxu0 %v616_v2  ;;  %536 = vmatprep.mubr.f32.mxu0 %v67_v9  ;;  %v628_v12 = vpack.c.bf16 %v28_v11, %v27_v10  ;;  %v29_v13 = vld [vmem:[%s937_s1 + $0x40] sm:$0xff]  ;;  %v30_v14 = vld [vmem:[%s937_s1 + $0x48] sm:$0xff]  ;;  %v39_v17 = vld [vmem:[%s939_s3 + $0x10] sm:$0xff] }
   0x5   :  { %619 = vmatpush3.bf16.msra.mxu0 %v616_v2  ;;  %v37_v15 = vld [vmem:[%s939_s3] sm:$0xff]  ;;  %v38_v16 = vld [vmem:[%s939_s3 + $0x8] sm:$0xff]  ;;  %v40_v19 = vld [vmem:[%s939_s3 + $0x18] sm:$0xff]  ;;  %v632_v20 = vpack.c.bf16 %v30_v14, %v29_v13 }
   0x6   :  { %621 = vmatprep.subr.bf16.mxu0 %v620_v5  ;;  %v648_v18 = vpack.c.bf16 %v38_v16, %v37_v15  ;;  %v652_v21 = vpack.c.bf16 %v40_v19, %v39_v17  ;;  %v41_v22 = vld [vmem:[%s939_s3 + $0x20] sm:$0xff]  ;;  %v42_v23 = vld [vmem:[%s939_s3 + $0x28] sm:$0xff]  ;;  %v31_v24 = vld [vmem:[%s937_s1 + $0x50] sm:$0xff] }
   0x7   :  { %v32_v25 = vld [vmem:[%s937_s1 + $0x58] sm:$0xff]  ;;  %v656_v26 = vpack.c.bf16 %v42_v23, %v41_v22  ;;  %v43_v28 = vld [vmem:[%s939_s3 + $0x30] sm:$0xff]  ;;  %v33_v30 = vld [vmem:[%s937_s1 + $0x60] sm:$0xff] }
   0x8   :  { %649 = vmatprep.subr.bf16.mxu1 %v648_v18  ;;  %v636_v27 = vpack.c.bf16 %v32_v25, %v31_v24  ;;  %v44_v29 = vld [vmem:[%s939_s3 + $0x38] sm:$0xff]  ;;  %v34_v31 = vld [vmem:[%s937_s1 + $0x68] sm:$0xff]  ;;  %v45_v34 = vld [vmem:[%s939_s3 + $0x40] sm:$0xff] }
   0x9   :  { %623 = vmatpush3.bf16.msra.mxu0 %v620_v5  ;;  %651 = vmatpush3.bf16.msra.mxu1 %v648_v18  ;;  %v660_v32 = vpack.c.bf16 %v44_v29, %v43_v28  ;;  %v640_v33 = vpack.c.bf16 %v34_v31, %v33_v30  ;;  %v46_v35 = vld [vmem:[%s939_s3 + $0x48] sm:$0xff]  ;;  %v35_v36 = vld [vmem:[%s937_s1 + $0x70] sm:$0xff]  ;;  %v36_v37 = vld [vmem:[%s937_s1 + $0x78] sm:$0xff] }
   0xa   :  { %625 = vmatprep.subr.bf16.mxu0 %v624_v8  ;;  %653 = vmatprep.subr.bf16.mxu1 %v652_v21  ;;  %v664_v38 = vpack.c.bf16 %v46_v35, %v45_v34  ;;  %v644_v39 = vpack.c.bf16 %v36_v37, %v35_v36  ;;  %v47_v40 = vld [vmem:[%s939_s3 + $0x50] sm:$0xff]  ;;  %v48_v41 = vld [vmem:[%s939_s3 + $0x58] sm:$0xff]  ;;  %v68_v43 = vld [vmem:[%s936_s0 + $0x8] sm:$0xff] }
   0xb   :  { %v668_v42 = vpack.c.bf16 %v48_v41, %v47_v40  ;;  %v69_v44 = vld [vmem:[%s936_s0 + $0x10] sm:$0xff]  ;;  %v70_v45 = vld [vmem:[%s936_s0 + $0x18] sm:$0xff]  ;;  %v71_v46 = vld [vmem:[%s936_s0 + $0x20] sm:$0xff] }
   0xc   :  { %v72_v47 = vld [vmem:[%s936_s0 + $0x28] sm:$0xff]  ;;  %v73_v48 = vld [vmem:[%s936_s0 + $0x30] sm:$0xff]  ;;  %v74_v49 = vld [vmem:[%s936_s0 + $0x38] sm:$0xff] }
   0xd   :  { %627 = vmatpush3.bf16.msra.mxu0 %v624_v8  ;;  %655 = vmatpush3.bf16.msra.mxu1 %v652_v21  ;;  %v75_v50 = vld [vmem:[%s936_s0 + $0x40] sm:$0xff]  ;;  %v76_v51 = vld [vmem:[%s936_s0 + $0x48] sm:$0xff]  ;;  %v77_v52 = vld [vmem:[%s936_s0 + $0x50] sm:$0xff] }
   0xe   :  { %629 = vmatprep.subr.bf16.mxu0 %v628_v12  ;;  %657 = vmatprep.subr.bf16.mxu1 %v656_v26  ;;  %v78_v53 = vld [vmem:[%s936_s0 + $0x58] sm:$0xff]  ;;  %v79_v54 = vld [vmem:[%s936_s0 + $0x60] sm:$0xff]  ;;  %v80_v55 = vld [vmem:[%s936_s0 + $0x68] sm:$0xff] }
   0xf   :  { %v81_v56 = vld [vmem:[%s936_s0 + $0x70] sm:$0xff]  ;;  %v82_v57 = vld [vmem:[%s936_s0 + $0x78] sm:$0xff]  ;;  %v49_v58 = vld [vmem:[%s939_s3 + $0x60] sm:$0xff] }
  0x10   :  { %v50_v59 = vld [vmem:[%s939_s3 + $0x68] sm:$0xff]  ;;  %v51_v61 = vld [vmem:[%s939_s3 + $0x70] sm:$0xff]  ;;  %v52_v62 = vld [vmem:[%s939_s3 + $0x78] sm:$0xff] }
  0x11   :  { %631 = vmatpush3.bf16.msra.mxu0 %v628_v12  ;;  %659 = vmatpush3.bf16.msra.mxu1 %v656_v26  ;;  %v672_v60 = vpack.c.bf16 %v50_v59, %v49_v58  ;;  %v676_v63 = vpack.c.bf16 %v52_v62, %v51_v61  ;;  %v887_v0 = vld [vmem:[%s938_s2] ss:$0 sm:$0xff] }
  0x12   :  { %633 = vmatprep.subr.bf16.mxu0 %v632_v20  ;;  %661 = vmatprep.subr.bf16.mxu1 %v660_v32 }
  0x15   :  { %635 = vmatpush3.bf16.msra.mxu0 %v632_v20  ;;  %663 = vmatpush3.bf16.msra.mxu1 %v660_v32 }
  0x16   :  { %637 = vmatprep.subr.bf16.mxu0 %v636_v27  ;;  %665 = vmatprep.subr.bf16.mxu1 %v664_v38 }
  0x19   :  { %639 = vmatpush3.bf16.msra.mxu0 %v636_v27  ;;  %667 = vmatpush3.bf16.msra.mxu1 %v664_v38 }
  0x1a   :  { %641 = vmatprep.subr.bf16.mxu0 %v640_v33  ;;  %669 = vmatprep.subr.bf16.mxu1 %v668_v42 }
  0x1d   :  { %643 = vmatpush3.bf16.msra.mxu0 %v640_v33  ;;  %671 = vmatpush3.bf16.msra.mxu1 %v668_v42 }
  0x1e   :  { %645 = vmatprep.subr.bf16.mxu0 %v644_v39  ;;  %673 = vmatprep.subr.bf16.mxu1 %v672_v60 }
  0x21   :  { %647 = vmatpush3.bf16.msra.mxu0 %v644_v39  ;;  %675 = vmatpush3.bf16.msra.mxu1 %v672_v60 }
  0x22   :  { %677 = vmatprep.subr.bf16.mxu1 %v676_v63 }
  0x24   :  { %537 = vmatmul.mubr.f32.vlgmr.msra.gmra.mrb[0].mxu0 %v68_v43 }
  0x25   :  { %539 = vmatprep.mubr.f32.mxu0 %v69_v44  ;;  %679 = vmatpush3.bf16.msra.mxu1 %v676_v63 }
  0x28   :  { %540 = vmatmul.mubr.f32.gmra.mrb[2].mxu0 %v70_v45 }
  0x29   :  { %542 = vmatprep.mubr.f32.mxu0 %v71_v46 }
  0x2c   :  { %543 = vmatmul.mubr.f32.gmra.mrb[4].mxu0 %v72_v47 }
  0x2d   :  { %545 = vmatprep.mubr.f32.mxu0 %v73_v48 }
  0x30   :  { %546 = vmatmul.mubr.f32.gmra.mrb[6].mxu0 %v74_v49 }
  0x31   :  { %548 = vmatprep.mubr.f32.mxu0 %v75_v50 }
  0x34   :  { %549 = vmatmul.mubr.f32.gmra.mrb[8].mxu0 %v76_v51 }
  0x35   :  { %551 = vmatprep.mubr.f32.mxu0 %v77_v52 }
  0x38   :  { %552 = vmatmul.mubr.f32.gmra.mrb[10].mxu0 %v78_v53 }
  0x39   :  { %554 = vmatprep.mubr.f32.mxu0 %v79_v54 }
  0x3c   :  { %555 = vmatmul.mubr.f32.gmra.mrb[12].mxu0 %v80_v55 }
  0x3d   :  { %557 = vmatprep.mubr.f32.mxu0 %v81_v56 }
  0x40   :  { %558 = vmatmul.mubr.f32.gmra.mrb[14].mxu0 %v82_v57 }
  0xf7   :  { %v538_v1 = vpop.f32.mrb[0].mxu0 }
  0xf8   :  { %v155_v2 = vadd.f32 %v538_v1, %v887_v0  ;;  %v149_v3 = vpop.f32.mrb[1].mxu0 }
  0xf9   :  { %v150_v4 = vadd.f32 %v887_v0, %v149_v3 }
  0xfa   :  { %v229_v5 = vmul.f32 0.01, %v155_v2 }
  0xfb   :  { %v541_v6 = vpop.f32.mrb[2].mxu0  ;;  %v228_v7 = vmul.f32 0.01, %v150_v4 }
  0xfc   :  { %v165_v8 = vadd.f32 %v541_v6, %v887_v0  ;;  %v159_v9 = vpop.f32.mrb[3].mxu0  ;;  %v245_v12 = vmax.f32 %v155_v2, %v229_v5  ;;  %v439_v2 = vld [vmem:[%s940_s4] ss:$0 sm:$0xff] }
  0xfd   :  { %v160_v10 = vadd.f32 %v887_v0, %v159_v9  ;;  %v244_v11 = vmax.f32 %v150_v4, %v228_v7 }
  0xfe   :  { %v231_v13 = vmul.f32 0.01, %v165_v8 }
  0xff   :  { %v230_v14 = vmul.f32 0.01, %v160_v10  ;;  %v544_v15 = vpop.f32.mrb[4].mxu0  ;;  %592 = vmatprep.mubr.f32.mxu1 %v244_v11 }
 0x100   :  { %v175_v16 = vadd.f32 %v544_v15, %v887_v0  ;;  %v169_v17 = vpop.f32.mrb[5].mxu0  ;;  %593 = vmatmul.mubr.f32.vlgmr.msra.gmra.mrb[0].mxu1 %v245_v12  ;;  %v247_v20 = vmax.f32 %v165_v8, %v231_v13 }
 0x101   :  { %v246_v18 = vmax.f32 %v160_v10, %v230_v14  ;;  %v170_v19 = vadd.f32 %v887_v0, %v169_v17 }
 0x102   :  { %v233_v21 = vmul.f32 0.01, %v175_v16 }
 0x103   :  { %v232_v22 = vmul.f32 0.01, %v170_v19  ;;  %v547_v23 = vpop.f32.mrb[6].mxu0  ;;  %595 = vmatprep.mubr.f32.mxu1 %v246_v18 }
 0x104   :  { %v185_v24 = vadd.f32 %v547_v23, %v887_v0  ;;  %v179_v25 = vpop.f32.mrb[7].mxu0  ;;  %596 = vmatmul.mubr.f32.gmra.mrb[2].mxu1 %v247_v20  ;;  %v249_v28 = vmax.f32 %v175_v16, %v233_v21 }
 0x105   :  { %v248_v26 = vmax.f32 %v170_v19, %v232_v22  ;;  %v180_v27 = vadd.f32 %v887_v0, %v179_v25 }
 0x106   :  { %v235_v29 = vmul.f32 0.01, %v185_v24 }
 0x107   :  { %v234_v30 = vmul.f32 0.01, %v180_v27  ;;  %v550_v31 = vpop.f32.mrb[8].mxu0  ;;  %598 = vmatprep.mubr.f32.mxu1 %v248_v26 }
 0x108   :  { %v195_v32 = vadd.f32 %v550_v31, %v887_v0  ;;  %v189_v33 = vpop.f32.mrb[9].mxu0  ;;  %599 = vmatmul.mubr.f32.gmra.mrb[4].mxu1 %v249_v28  ;;  %v251_v36 = vmax.f32 %v185_v24, %v235_v29 }
 0x109   :  { %v250_v34 = vmax.f32 %v180_v27, %v234_v30  ;;  %v190_v35 = vadd.f32 %v887_v0, %v189_v33 }
 0x10a   :  { %v237_v37 = vmul.f32 0.01, %v195_v32 }
 0x10b   :  { %v236_v38 = vmul.f32 0.01, %v190_v35  ;;  %v553_v39 = vpop.f32.mrb[10].mxu0  ;;  %601 = vmatprep.mubr.f32.mxu1 %v250_v34 }
 0x10c   :  { %v205_v40 = vadd.f32 %v553_v39, %v887_v0  ;;  %v199_v41 = vpop.f32.mrb[11].mxu0  ;;  %602 = vmatmul.mubr.f32.gmra.mrb[6].mxu1 %v251_v36  ;;  %v253_v44 = vmax.f32 %v195_v32, %v237_v37 }
 0x10d   :  { %v252_v42 = vmax.f32 %v190_v35, %v236_v38  ;;  %v200_v43 = vadd.f32 %v887_v0, %v199_v41 }
 0x10e   :  { %v239_v45 = vmul.f32 0.01, %v205_v40 }
 0x10f   :  { %v238_v46 = vmul.f32 0.01, %v200_v43  ;;  %v556_v47 = vpop.f32.mrb[12].mxu0  ;;  %604 = vmatprep.mubr.f32.mxu1 %v252_v42 }
 0x110   :  { %v215_v48 = vadd.f32 %v556_v47, %v887_v0  ;;  %v209_v49 = vpop.f32.mrb[13].mxu0  ;;  %605 = vmatmul.mubr.f32.gmra.mrb[8].mxu1 %v253_v44  ;;  %v255_v52 = vmax.f32 %v205_v40, %v239_v45 }
 0x111   :  { %v254_v50 = vmax.f32 %v200_v43, %v238_v46  ;;  %v210_v51 = vadd.f32 %v887_v0, %v209_v49 }
 0x112   :  { %v241_v53 = vmul.f32 0.01, %v215_v48 }
 0x113   :  { %v240_v54 = vmul.f32 0.01, %v210_v51  ;;  %v559_v55 = vpop.f32.mrb[14].mxu0  ;;  %607 = vmatprep.mubr.f32.mxu1 %v254_v50 }
 0x114   :  { %v225_v56 = vadd.f32 %v559_v55, %v887_v0  ;;  %v219_v57 = vpop.f32.mrb[15].mxu0  ;;  %608 = vmatmul.mubr.f32.gmra.mrb[10].mxu1 %v255_v52  ;;  %v257_v60 = vmax.f32 %v215_v48, %v241_v53 }
 0x115   :  { %v256_v58 = vmax.f32 %v210_v51, %v240_v54  ;;  %v220_v59 = vadd.f32 %v887_v0, %v219_v57 }
 0x116   :  { %v243_v61 = vmul.f32 0.01, %v225_v56 }
 0x117   :  { %v242_v62 = vmul.f32 0.01, %v220_v59  ;;  %610 = vmatprep.mubr.f32.mxu1 %v256_v58 }
 0x118   :  { %611 = vmatmul.mubr.f32.gmra.mrb[12].mxu1 %v257_v60  ;;  %v259_v1 = vmax.f32 %v225_v56, %v243_v61 }
 0x119   :  { %v258_v63 = vmax.f32 %v220_v59, %v242_v62 }
 0x11b   :  { %613 = vmatprep.mubr.f32.mxu1 %v258_v63 }
 0x11c   :  { %614 = vmatmul.mubr.f32.gmra.mrb[14].mxu1 %v259_v1 }
 0x1d3   :  { %v594_v3 = vpop.f32.mrb[0].mxu1 }
 0x1d4   :  { %v332_v4 = vadd.f32 %v594_v3, %v439_v2  ;;  %v326_v5 = vpop.f32.mrb[1].mxu1 }
 0x1d5   :  { %v327_v6 = vadd.f32 %v439_v2, %v326_v5 }
 0x1d6   :  { %407 = vst.msk [vmem:[#allocation2 + $0x8] sm:$0xff] %vm405_vm0, %v332_v4 }
 0x1d7   :  { %406 = vst.msk [vmem:[#allocation2] sm:$0xff] %vm405_vm0, %v327_v6  ;;  %v597_v0 = vpop.f32.mrb[2].mxu1 }
 0x1d8   :  { %v342_v7 = vadd.f32 %v597_v0, %v439_v2  ;;  %v336_v8 = vpop.f32.mrb[3].mxu1 }
 0x1d9   :  { %v337_v9 = vadd.f32 %v439_v2, %v336_v8 }
 0x1da   :  { %409 = vst.msk [vmem:[#allocation2 + $0x18] sm:$0xff] %vm405_vm0, %v342_v7 }
 0x1db   :  { %408 = vst.msk [vmem:[#allocation2 + $0x10] sm:$0xff] %vm405_vm0, %v337_v9  ;;  %v600_v10 = vpop.f32.mrb[4].mxu1 }
 0x1dc   :  { %v352_v11 = vadd.f32 %v600_v10, %v439_v2  ;;  %v346_v12 = vpop.f32.mrb[5].mxu1 }
 0x1dd   :  { %v347_v13 = vadd.f32 %v439_v2, %v346_v12 }
 0x1de   :  { %411 = vst.msk [vmem:[#allocation2 + $0x28] sm:$0xff] %vm405_vm0, %v352_v11 }
 0x1df   :  { %410 = vst.msk [vmem:[#allocation2 + $0x20] sm:$0xff] %vm405_vm0, %v347_v13  ;;  %v603_v14 = vpop.f32.mrb[6].mxu1 }
 0x1e0   :  { %v362_v15 = vadd.f32 %v603_v14, %v439_v2  ;;  %v356_v16 = vpop.f32.mrb[7].mxu1 }
 0x1e1   :  { %v357_v17 = vadd.f32 %v439_v2, %v356_v16 }
 0x1e2   :  { %413 = vst.msk [vmem:[#allocation2 + $0x38] sm:$0xff] %vm405_vm0, %v362_v15 }
 0x1e3   :  { %412 = vst.msk [vmem:[#allocation2 + $0x30] sm:$0xff] %vm405_vm0, %v357_v17  ;;  %v606_v18 = vpop.f32.mrb[8].mxu1 }
 0x1e4   :  { %v372_v19 = vadd.f32 %v606_v18, %v439_v2  ;;  %v366_v20 = vpop.f32.mrb[9].mxu1 }
 0x1e5   :  { %v367_v21 = vadd.f32 %v439_v2, %v366_v20 }
 0x1e6   :  { %415 = vst.msk [vmem:[#allocation2 + $0x48] sm:$0xff] %vm405_vm0, %v372_v19 }
 0x1e7   :  { %414 = vst.msk [vmem:[#allocation2 + $0x40] sm:$0xff] %vm405_vm0, %v367_v21  ;;  %v609_v22 = vpop.f32.mrb[10].mxu1 }
 0x1e8   :  { %v382_v23 = vadd.f32 %v609_v22, %v439_v2  ;;  %v376_v24 = vpop.f32.mrb[11].mxu1 }
 0x1e9   :  { %v377_v25 = vadd.f32 %v439_v2, %v376_v24 }
 0x1ea   :  { %417 = vst.msk [vmem:[#allocation2 + $0x58] sm:$0xff] %vm405_vm0, %v382_v23 }
 0x1eb   :  { %416 = vst.msk [vmem:[#allocation2 + $0x50] sm:$0xff] %vm405_vm0, %v377_v25  ;;  %v612_v26 = vpop.f32.mrb[12].mxu1 }
 0x1ec   :  { %v392_v27 = vadd.f32 %v612_v26, %v439_v2  ;;  %v386_v28 = vpop.f32.mrb[13].mxu1 }
 0x1ed   :  { %v387_v29 = vadd.f32 %v439_v2, %v386_v28 }
 0x1ee   :  { %419 = vst.msk [vmem:[#allocation2 + $0x68] sm:$0xff] %vm405_vm0, %v392_v27 }
 0x1ef   :  { %418 = vst.msk [vmem:[#allocation2 + $0x60] sm:$0xff] %vm405_vm0, %v387_v29  ;;  %v615_v30 = vpop.f32.mrb[14].mxu1 }
 0x1f0   :  { %v402_v31 = vadd.f32 %v615_v30, %v439_v2  ;;  %v396_v32 = vpop.f32.mrb[15].mxu1 }
 0x1f1   :  { %v397_v33 = vadd.f32 %v439_v2, %v396_v32 }
 0x1f2   :  { %421 = vst.msk [vmem:[#allocation2 + $0x78] sm:$0xff] %vm405_vm0, %v402_v31 }
 0x1f3   :  { %420 = vst.msk [vmem:[#allocation2 + $0x70] sm:$0xff] %vm405_vm0, %v397_v33 }
 0x1f4   :  { %426 = vsyncadd [#allocation3], 1792  ;;  %s707_s4 = smov [#allocation2]  }
 0x1f5   :  { %s427_s13 = sshll.u32 %s707_s4, 4  ;;  %s428_s13 = int_to_ptr.vmem [resolvable:$true] %s427_s13 }
 0x1f6   :  { %s683_s14 = scalar_lea.vmem %s428_s13, 256  ;;  %s687_s15 = scalar_lea.vmem %s428_s13, 2048 }
 0x1f7   :  { %p684_p0 = scmp.ne.s32.totalorder %s428_s13, %s683_s14  ;;  %p688_p1 = scmp.lt.s32.totalorder %s428_s13, %s428_s13 }
 0x1f8   :  { %p689_p2 = scmp.lt.s32.totalorder %s687_s15, %s683_s14 }
 0x1fa   :  { %p690_p3 = por %p689_p2, %p688_p1 }
 0x1fc   :  { %p691_p4 = pnand %p690_p3, %p684_p0 }
 0x1fe   :  { %694 = shalt.err (!%p691_p4)
}
 0x1ff   :  { %s695_s18 = scalar_lea.hbm %s941_s5, 256 }
 0x200   :  { %p696_p5 = scmp.ne.s32.totalorder %s941_s5, %s695_s18  ;;  %p699_p6 = scmp.lt.u32.totalorder %s695_s18, %s941_s5 }
 0x202   :  { %p701_p7 = pnand %p699_p6, %p696_p5 }
 0x204   :  { %704 = shalt.err (!%p701_p7)
}
 0x205   :  { %s708_s23 = smov 128   ;;  %s709_s24 = smov 8  }
 0x206   :  { %433 = dma.vmem_to_hbm [thread:$0]  %s428_s13, 256, %s941_s5, [#allocation3], %s708_s23, %s708_s23, %s709_s24  }
 0x207   :  { %705 = dma.done.wait [#allocation3], 2048  }
 0x208   :  { %706 = vsyncadd [#allocation3], 4294965248 }
 0x209   :  { %437 = vsyncpa [#allocation3], 1 }

</bundles_post_ra>
